<compile_context>
chip_gen: v7x
topology: tpu7x:2x2x1
jax: 0.10.0
libtpu: 0.0.40
codegen_flags: <defaults>
</compile_context>

<pallas_src>
import functools

import jax
import jax.numpy as jnp
from jax.experimental import pallas as pl
from jax.experimental.pallas import tpu as pltpu

_LANE = 128      # lane width of a vreg
_SUBLANE = 8     # sublane count of a vreg


def _round_up(n, m):
    return ((n + m - 1) // m) * m


def _mlp_kernel(x_ref, p_ref, o_ref, *, layout):
    """Fused MLP.  x_ref: [B, in], p_ref: packed [rows, lane] param slab.

    layout[i] = (w_row0, w_rows, b_row0): static row offsets of layer i's
    (pre-transposed, lane-padded) weight block and bias row inside the slab.
    """
    h = x_ref[...]
    n_layers = len(layout)
    for i, (w_r0, w_rows, b_r0) in enumerate(layout):
        w = p_ref[w_r0:w_r0 + w_rows, :]      # [w_rows, lane]  (static slice)
        b = p_ref[b_r0:b_r0 + 1, :]           # [1, lane]       (static slice)
        h = jnp.dot(h, w, preferred_element_type=jnp.float32) + b
        if i < n_layers - 1:                  # ReLU on hidden layers only
            h = jnp.maximum(h, 0.0)
    o_ref[...] = h                            # [B, lane] — lane-dense, unmasked store


def _fused_forward(x, slab, *, layout, lane, out_size):
    """Single grid-less pallas_call; output padded to `lane`, sliced here."""
    B = x.shape[0]
    y = pl.pallas_call(
        functools.partial(_mlp_kernel, layout=layout),
        out_shape=jax.ShapeDtypeStruct((B, lane), jnp.float32),
        in_specs=[
            pl.BlockSpec(memory_space=pltpu.MemorySpace.VMEM),   # x
            pl.BlockSpec(memory_space=pltpu.MemorySpace.VMEM),   # packed params
        ],
        out_specs=pl.BlockSpec(memory_space=pltpu.MemorySpace.VMEM),
    )(x, slab)
    return y[:, :out_size]


class NeuralNetworkPallas:
    """JAX/Pallas re-implementation of the PyTorch NeuralNetwork forward pass."""

    def __init__(self, input_size, output_size, hidden_sizes, key):
        self.input_size = int(input_size)
        self.output_size = int(output_size)
        self.hidden_sizes = list(hidden_sizes)

        dims = [self.input_size] + self.hidden_sizes + [self.output_size]
        # Lane width: 128, or wider if any layer output exceeds 128.
        lane = max(_LANE, _round_up(max(dims[1:]), _LANE))
        self._lane = lane

        segments = []     # pieces of the packed slab, all [*, lane]
        layout = []       # (w_row0, w_rows, b_row0) per layer
        self.ref_params = []   # unpadded (W_t [fin,fout], b [fout]) for reference checks
        row = 0
        in_rows = self.input_size             # layer-0 contraction dim = real input width
        for fin, fout in zip(dims[:-1], dims[1:]):
            key, kw, kb = jax.random.split(key, 3)
            # torch.nn.Linear-style init: uniform +/- 1/sqrt(fan_in).
            bound = 1.0 / float(fin) ** 0.5
            w = jax.random.uniform(kw, (fout, fin), jnp.float32, -bound, bound)
            b = jax.random.uniform(kb, (fout,), jnp.float32, -bound, bound)
            self.ref_params.append((w.T, b))

            # Zero-padded, pre-transposed weight block [w_seg_rows, lane];
            # padded rows/cols are EXACT zeros so padded activations stay zero.
            w_seg_rows = _round_up(in_rows, _SUBLANE)
            w_seg = jnp.zeros((w_seg_rows, lane), jnp.float32)
            w_seg = w_seg.at[:fin, :fout].set(w.T)
            # Bias block: 8 rows for alignment, data in row 0, zero-padded lanes.
            b_seg = jnp.zeros((_SUBLANE, lane), jnp.float32)
            b_seg = b_seg.at[0, :fout].set(b)

            segments.append(w_seg)
            segments.append(b_seg)
            layout.append((row, in_rows, row + w_seg_rows))
            row += w_seg_rows + _SUBLANE
            in_rows = lane                    # activations after layer 0 are [B, lane]

        self._layout = tuple(layout)
        # Single persistent device array holding every parameter (lane-dense).
        self.packed = jnp.concatenate(segments, axis=0)

        # One jitted, fully fused forward: one kernel launch per call.
        self._forward = jax.jit(
            functools.partial(
                _fused_forward,
                layout=self._layout,
                lane=self._lane,
                out_size=self.output_size,
            )
        )

    def forward(self, x):
        x = jnp.asarray(x, dtype=jnp.float32)
        return self._forward(x, self.packed)


if __name__ == "__main__":
    key = jax.random.PRNGKey(0)
    k_net, k_x = jax.random.split(key)

    batch = 8
    input_size = 32
    hidden_sizes = [64, 32]
    output_size = 8

    net = NeuralNetworkPallas(input_size, output_size, hidden_sizes, k_net)
    x = jax.random.normal(k_x, (batch, input_size), dtype=jnp.float32)

    out = net.forward(x)
    out = jax.block_until_ready(out)

    # Sanity check against a plain-JAX reference of the same (unpadded) math.
    ref = x
    for i, (w_t, b) in enumerate(net.ref_params):
        ref = ref @ w_t + b
        if i < len(net.hidden_sizes):
            ref = jnp.maximum(ref, 0.0)

    assert out.shape == (batch, output_size), out.shape
    assert jnp.allclose(out, ref, atol=1e-5, rtol=1e-5)

    print("KERNEL_OK")
</pallas_src>

<mosaic_0001>
module attributes {stable_mosaic.version = 11 : i64} {
  func.func @_mlp_kernel(%arg0: memref<8x32xf32, #tpu.memory_space<vmem>>, %arg1: memref<312x128xf32, #tpu.memory_space<vmem>>, %arg2: memref<8x128xf32, #tpu.memory_space<vmem>>) attributes {dimension_semantics = [], scalar_prefetch = 0 : i64, scratch_operands = 0 : i64, tpu.core_type = #tpu.core_type<tc>} {
    %c0 = arith.constant 0 : index
    %c0_0 = arith.constant 0 : index
    %0 = vector.load %arg0[%c0, %c0_0] : memref<8x32xf32, #tpu.memory_space<vmem>>, vector<8x32xf32>
    %c0_1 = arith.constant 0 : index
    %c0_2 = arith.constant 0 : index
    %1 = vector.load %arg1[%c0_1, %c0_2] : memref<312x128xf32, #tpu.memory_space<vmem>>, vector<32x128xf32>
    %c32 = arith.constant 32 : index
    %c0_3 = arith.constant 0 : index
    %2 = vector.load %arg1[%c32, %c0_3] : memref<312x128xf32, #tpu.memory_space<vmem>>, vector<1x128xf32>
    %cst = arith.constant dense<0.000000e+00> : vector<8x128xf32>
    %3 = tpu.matmul %0, %1, %cst {dimension_numbers = #tpu.dot_dimension_numbers<[1], [0], [0], [1], [0, 0, 1, 1], [], []>} : vector<8x32xf32>, vector<32x128xf32>, vector<8x128xf32> -> vector<8x128xf32>
    %4 = vector.broadcast %2 : vector<1x128xf32> to vector<8x128xf32>
    %5 = arith.addf %3, %4 : vector<8x128xf32>
    %cst_4 = arith.constant 0.000000e+00 : f32
    %6 = vector.broadcast %cst_4 : f32 to vector<8x128xf32>
    %7 = arith.maximumf %5, %6 : vector<8x128xf32>
    %c40 = arith.constant 40 : index
    %c0_5 = arith.constant 0 : index
    %8 = vector.load %arg1[%c40, %c0_5] : memref<312x128xf32, #tpu.memory_space<vmem>>, vector<128x128xf32>
    %c168 = arith.constant 168 : index
    %c0_6 = arith.constant 0 : index
    %9 = vector.load %arg1[%c168, %c0_6] : memref<312x128xf32, #tpu.memory_space<vmem>>, vector<1x128xf32>
    %cst_7 = arith.constant dense<0.000000e+00> : vector<8x128xf32>
    %10 = tpu.matmul %7, %8, %cst_7 {dimension_numbers = #tpu.dot_dimension_numbers<[1], [0], [0], [1], [0, 0, 1, 1], [], []>} : vector<8x128xf32>, vector<128x128xf32>, vector<8x128xf32> -> vector<8x128xf32>
    %11 = vector.broadcast %9 : vector<1x128xf32> to vector<8x128xf32>
    %12 = arith.addf %10, %11 : vector<8x128xf32>
    %cst_8 = arith.constant 0.000000e+00 : f32
    %13 = vector.broadcast %cst_8 : f32 to vector<8x128xf32>
    %14 = arith.maximumf %12, %13 : vector<8x128xf32>
    %c176 = arith.constant 176 : index
    %c0_9 = arith.constant 0 : index
    %15 = vector.load %arg1[%c176, %c0_9] : memref<312x128xf32, #tpu.memory_space<vmem>>, vector<128x128xf32>
    %c304 = arith.constant 304 : index
    %c0_10 = arith.constant 0 : index
    %16 = vector.load %arg1[%c304, %c0_10] : memref<312x128xf32, #tpu.memory_space<vmem>>, vector<1x128xf32>
    %cst_11 = arith.constant dense<0.000000e+00> : vector<8x128xf32>
    %17 = tpu.matmul %14, %15, %cst_11 {dimension_numbers = #tpu.dot_dimension_numbers<[1], [0], [0], [1], [0, 0, 1, 1], [], []>} : vector<8x128xf32>, vector<128x128xf32>, vector<8x128xf32> -> vector<8x128xf32>
    %18 = vector.broadcast %16 : vector<1x128xf32> to vector<8x128xf32>
    %19 = arith.addf %17, %18 : vector<8x128xf32>
    %c0_12 = arith.constant 0 : index
    %c0_13 = arith.constant 0 : index
    %20 = vector.load %arg2[%c0_12, %c0_13] : memref<8x128xf32, #tpu.memory_space<vmem>>, vector<8x128xf32>
    tpu.vector_store %arg2[%c0_12, %c0_13], %19 {strides = array<i32>} : memref<8x128xf32, #tpu.memory_space<vmem>>, vector<8x128xf32>,
    return
  }
}

</mosaic_0001>

<bundles_post_ra>
// kernel: _fused_forward.1
= control target key start
LH: loop header
LB: loop body
LE: loop exit
PB: predicated region body
PF: predicated region fallthrough
CT: control target
= control target key end

     0   :  { %7 = vsyncpa [#allocation3], 0  ;;  %s668_s0 = inlined_call_operand.hbm [shape: f32[8,32], index: 0, kind: input, shape index: {}]   ;;  %s669_s1 = inlined_call_operand.hbm [shape: f32[312,128], index: 1, kind: input, shape index: {}]   ;;  %s670_s2 = inlined_call_operand.hbm [shape: f32[8,128], index: 2, kind: output, shape index: {}]  }
   0x1   :  { %8 = vsyncpa [#allocation6], 0 }
   0x2   :  { %9 = vsyncpa [#allocation4], 0  ;;  %s581_s9 = smov [#allocation2]   ;;  %s582_s11 = smov [#allocation5]  }
   0x3   :  { %s16_s10 = sshll.u32 %s581_s9, 4  ;;  %s25_s12 = sshll.u32 %s582_s11, 4  ;;  %s17_s10 = int_to_ptr.vmem [resolvable:$true] %s16_s10  ;;  %s604_s12 = int_to_ptr.vmem [resolvable:$true] %s25_s12 }
   0x4   :  { %s509_s15 = scalar_lea.hbm %s668_s0, 128 }
   0x5   :  { %p510_p0 = scmp.ne.s32.totalorder %s668_s0, %s509_s15  ;;  %p513_p1 = scmp.lt.u32.totalorder %s509_s15, %s668_s0 }
   0x7   :  { %p515_p2 = pnand %p513_p1, %p510_p0 }
   0x9   :  { %518 = shalt.err (!%p515_p2)
}
   0xa   :  { %s519_s20 = scalar_lea.vmem %s17_s10, 128  ;;  %p524_p4 = scmp.lt.s32.totalorder %s17_s10, %s17_s10 }
   0xb   :  { %p520_p3 = scmp.ne.s32.totalorder %s17_s10, %s519_s20  ;;  %p525_p5 = scmp.lt.s32.totalorder %s519_s20, %s519_s20 }
   0xd   :  { %p526_p6 = por %p525_p5, %p524_p4 }
   0xf   :  { %p527_p7 = pnand %p526_p6, %p520_p3 }
  0x11   :  { %530 = shalt.err (!%p527_p7)
}
  0x12   :  { %19 = dma.hbm_to_vmem [thread:$0]  %s668_s0, 128, %s17_s10, [#allocation3]  }
  0x13   :  { %s531_s25 = scalar_lea.hbm %s669_s1, 4992 }
  0x14   :  { %p532_p8 = scmp.ne.s32.totalorder %s669_s1, %s531_s25  ;;  %p535_p9 = scmp.lt.u32.totalorder %s531_s25, %s669_s1 }
  0x16   :  { %p537_p10 = pnand %p535_p9, %p532_p8 }
  0x18   :  { %540 = shalt.err (!%p537_p10)
}
  0x19   :  { %s541_s30 = scalar_lea.vmem %s604_s12, 4992  ;;  %p546_p12 = scmp.lt.s32.totalorder %s604_s12, %s604_s12 }
  0x1a   :  { %p542_p11 = scmp.ne.s32.totalorder %s604_s12, %s541_s30  ;;  %p547_p13 = scmp.lt.s32.totalorder %s541_s30, %s541_s30 }
  0x1c   :  { %p548_p0 = por %p547_p13, %p546_p12 }
  0x1e   :  { %p549_p1 = pnand %p548_p0, %p542_p11 }
  0x20   :  { %552 = shalt.err (!%p549_p1)
}
  0x21   :  { %s583_s0 = smov 128   ;;  %s584_s3 = smov 8  }
  0x22   :  { %31 = dma.hbm_to_vmem [thread:$0]  %s669_s1, 4992, %s604_s12, [#allocation6], %s583_s0, %s583_s0, %s584_s3  }
  0x23   :  { %575 = dma.done.wait [#allocation3], 128  }
  0x24   :  { %576 = vsyncadd [#allocation3], 4294967168 }
  0x25   :  { %577 = dma.done.wait [#allocation6], 4992  }
  0x26   :  { %578 = vsyncadd [#allocation6], 4294962304  ;;  %v585_v0 = vmov 0.0|0.0   ;;  %vm586_vm0 = vmmov 0   ;;  %v587_v1 = vmov 0.0   ;;  %v39_v2 = vld [vmem:[#allocation5] sm:$0xff] }
  0x27   :  { %447 = vmatprep.subr.bf16.mxu0 %v585_v0  ;;  %374 = vmatprep.mubr.msk.f32.mxu0 %vm586_vm0, %v587_v1  ;;  %v40_v3 = vld [vmem:[#allocation5 + $0x8] sm:$0xff]  ;;  %v41_v4 = vld [vmem:[#allocation5 + $0x10] sm:$0xff]  ;;  %v42_v6 = vld [vmem:[#allocation5 + $0x18] sm:$0xff]  ;;  %vm48_vm1 = vcmask 261120   ;;  %s588_s1 = smov [#allocation7]  }
  0x28   :  { %453 = vmatprep.subr.bf16.mxu1 %v585_v0  ;;  %409 = vmatprep.mubr.msk.f32.mxu1 %vm586_vm0, %v587_v1  ;;  %v448_v5 = vpack.c.bf16 %v40_v3, %v39_v2  ;;  %v123_v7 = vld [vmem:[#allocation5 + $0x28] sm:$0xff]  ;;  %v124_v8 = vld [vmem:[#allocation5 + $0x30] sm:$0xff]  ;;  %v125_v9 = vld [vmem:[#allocation5 + $0x38] sm:$0xff]  ;;  %v451_v11 = vpack.c.bf16 %v42_v6, %v41_v4  ;;  %s313_s6 = sshll.u32 %s588_s1, 4  ;;  %s314_s6 = int_to_ptr.vmem [resolvable:$true] %s313_s6 }
  0x29   :  { %v126_v10 = vld [vmem:[#allocation5 + $0x40] sm:$0xff]  ;;  %v454_v12 = vpack.c.bf16 %v124_v8, %v123_v7  ;;  %v127_v14 = vld [vmem:[#allocation5 + $0x48] sm:$0xff]  ;;  %v128_v15 = vld [vmem:[#allocation5 + $0x50] sm:$0xff]  ;;  %s553_s7 = scalar_lea.vmem %s314_s6, 128  ;;  %p558_p3 = scmp.lt.s32.totalorder %s314_s6, %s314_s6 }
  0x2a   :  { %449 = vmatpush3.bf16.msra.mxu0 %v448_v5  ;;  %v457_v13 = vpack.c.bf16 %v126_v10, %v125_v9  ;;  %v38_v16 = vld [vmem:[#allocation2] sm:$0xff]  ;;  %v460_v17 = vpack.c.bf16 %v128_v15, %v127_v14  ;;  %v130_v19 = vld [vmem:[#allocation5 + $0x60] sm:$0xff]  ;;  %v131_v21 = vld [vmem:[#allocation5 + $0x68] sm:$0xff]  ;;  %p554_p2 = scmp.ne.s32.totalorder %s314_s6, %s553_s7  ;;  %p559_p4 = scmp.lt.s32.totalorder %s553_s7, %s553_s7 }
  0x2b   :  { %450 = vmatprep.subr.bf16.mxu0 %v585_v0  ;;  %455 = vmatpush3.bf16.msra.mxu1 %v454_v12  ;;  %v129_v18 = vld [vmem:[#allocation5 + $0x58] sm:$0xff]  ;;  %v132_v22 = vld [vmem:[#allocation5 + $0x70] sm:$0xff]  ;;  %v134_v25 = vld [vmem:[#allocation5 + $0x80] sm:$0xff] }
  0x2c   :  { %456 = vmatprep.subr.bf16.mxu1 %v585_v0  ;;  %v463_v20 = vpack.c.bf16 %v130_v19, %v129_v18  ;;  %v466_v23 = vpack.c.bf16 %v132_v22, %v131_v21  ;;  %v133_v24 = vld [vmem:[#allocation5 + $0x78] sm:$0xff]  ;;  %v135_v27 = vld [vmem:[#allocation5 + $0x88] sm:$0xff]  ;;  %v136_v28 = vld [vmem:[#allocation5 + $0x90] sm:$0xff]  ;;  %p560_p5 = por %p559_p4, %p558_p3 }
  0x2d   :  { %v469_v26 = vpack.c.bf16 %v134_v25, %v133_v24  ;;  %v472_v29 = vpack.c.bf16 %v136_v28, %v135_v27  ;;  %v137_v30 = vld [vmem:[#allocation5 + $0x98] sm:$0xff]  ;;  %v138_v31 = vld [vmem:[#allocation5 + $0xa0] sm:$0xff]  ;;  %v215_v33 = vld [vmem:[#allocation5 + $0xb0] sm:$0xff] }
  0x2e   :  { %452 = vmatpush3.bf16.msra.mxu0 %v451_v11  ;;  %v475_v32 = vpack.c.bf16 %v138_v31, %v137_v30  ;;  %v216_v34 = vld [vmem:[#allocation5 + $0xb8] sm:$0xff]  ;;  %v217_v35 = vld [vmem:[#allocation5 + $0xc0] sm:$0xff]  ;;  %v218_v37 = vld [vmem:[#allocation5 + $0xc8] sm:$0xff]  ;;  %p561_p6 = pnand %p560_p5, %p554_p2 }
  0x2f   :  { %477 = vmatprep.subr.bf16.mxu0 %v585_v0  ;;  %458 = vmatpush3.bf16.msra.mxu1 %v457_v13  ;;  %v478_v36 = vpack.c.bf16 %v216_v34, %v215_v33  ;;  %v481_v38 = vpack.c.bf16 %v218_v37, %v217_v35  ;;  %v219_v39 = vld [vmem:[#allocation5 + $0xd0] sm:$0xff]  ;;  %v220_v40 = vld [vmem:[#allocation5 + $0xd8] sm:$0xff]  ;;  %v221_v42 = vld [vmem:[#allocation5 + $0xe0] sm:$0xff] }
  0x30   :  { %459 = vmatprep.subr.bf16.mxu1 %v585_v0  ;;  %v484_v41 = vpack.c.bf16 %v220_v40, %v219_v39  ;;  %v222_v43 = vld [vmem:[#allocation5 + $0xe8] sm:$0xff]  ;;  %v223_v45 = vld [vmem:[#allocation5 + $0xf0] sm:$0xff]  ;;  %v224_v46 = vld [vmem:[#allocation5 + $0xf8] sm:$0xff] }
  0x31   :  { %375 = vmatmul.mubr.msk.f32.vlgmr.msra.gmra.mrb[0].mxu0 %vm48_vm1, %v38_v16  ;;  %v487_v44 = vpack.c.bf16 %v222_v43, %v221_v42  ;;  %v490_v47 = vpack.c.bf16 %v224_v46, %v223_v45  ;;  %v225_v48 = vld [vmem:[#allocation5 + $0x100] sm:$0xff]  ;;  %v226_v49 = vld [vmem:[#allocation5 + $0x108] sm:$0xff]  ;;  %v227_v51 = vld [vmem:[#allocation5 + $0x110] sm:$0xff] }
  0x32   :  { %444 = vmatprep.mubr.msk.f32.mxu0 %vm586_vm0, %v587_v1  ;;  %479 = vmatpush3.bf16.msra.mxu0 %v478_v36  ;;  %v493_v50 = vpack.c.bf16 %v226_v49, %v225_v48  ;;  %v228_v52 = vld [vmem:[#allocation5 + $0x118] sm:$0xff]  ;;  %v323_v54 = vld [vmem:[#allocation5 + $0x20] ss:$0 sm:$0xff]  ;;  %v230_v60 = vld [vmem:[#allocation5 + $0x128] sm:$0xff] }
  0x33   :  { %461 = vmatpush3.bf16.msra.mxu1 %v460_v17  ;;  %480 = vmatprep.subr.bf16.mxu0 %v585_v0  ;;  %v496_v53 = vpack.c.bf16 %v228_v52, %v227_v51  ;;  %v229_v59 = vld [vmem:[#allocation5 + $0x120] sm:$0xff]  ;;  %v325_v62 = vld [vmem:[#allocation5 + $0xa8] ss:$0 sm:$0xff]  ;;  %v326_v4 = vld [vmem:[#allocation5 + $0x130] ss:$0 sm:$0xff] }
  0x34   :  { %462 = vmatprep.subr.bf16.mxu1 %v585_v0  ;;  %v499_v61 = vpack.c.bf16 %v230_v60, %v229_v59 }
  0x36   :  { %482 = vmatpush3.bf16.msra.mxu0 %v481_v38 }
  0x37   :  { %464 = vmatpush3.bf16.msra.mxu1 %v463_v20  ;;  %483 = vmatprep.subr.bf16.mxu0 %v585_v0 }
  0x38   :  { %465 = vmatprep.subr.bf16.mxu1 %v585_v0 }
  0x3a   :  { %485 = vmatpush3.bf16.msra.mxu0 %v484_v41 }
  0x3b   :  { %467 = vmatpush3.bf16.msra.mxu1 %v466_v23  ;;  %486 = vmatprep.subr.bf16.mxu0 %v585_v0 }
  0x3c   :  { %468 = vmatprep.subr.bf16.mxu1 %v585_v0 }
  0x3e   :  { %488 = vmatpush3.bf16.msra.mxu0 %v487_v44 }
  0x3f   :  { %470 = vmatpush3.bf16.msra.mxu1 %v469_v26  ;;  %489 = vmatprep.subr.bf16.mxu0 %v585_v0 }
  0x40   :  { %471 = vmatprep.subr.bf16.mxu1 %v585_v0 }
  0x42   :  { %491 = vmatpush3.bf16.msra.mxu0 %v490_v47 }
  0x43   :  { %473 = vmatpush3.bf16.msra.mxu1 %v472_v29  ;;  %492 = vmatprep.subr.bf16.mxu0 %v585_v0 }
  0x44   :  { %474 = vmatprep.subr.bf16.mxu1 %v585_v0 }
  0x46   :  { %494 = vmatpush3.bf16.msra.mxu0 %v493_v50 }
  0x47   :  { %476 = vmatpush3.bf16.msra.mxu1 %v475_v32  ;;  %495 = vmatprep.subr.bf16.mxu0 %v585_v0 }
  0x4a   :  { %497 = vmatpush3.bf16.msra.mxu0 %v496_v53 }
  0x4b   :  { %498 = vmatprep.subr.bf16.mxu0 %v585_v0 }
  0x4e   :  { %500 = vmatpush3.bf16.msra.mxu0 %v499_v61 }
 0x104   :  { %v118_v55 = vpop.f32.mrb[0].mxu0 }
 0x105   :  { %v119_v56 = vadd.f32 %v323_v54, %v118_v55  ;;  %v376_v57 = vpop.f32.mrb[1].mxu0 }
 0x107   :  { %v122_v58 = vmax.f32 %v119_v56, 0.0 }
 0x109   :  { %410 = vmatmul.mubr.f32.vlgmr.msra.gmra.mrb[0].mxu1 %v122_v58 }
 0x1dc   :  { %v210_v63 = vpop.f32.mrb[0].mxu1 }
 0x1dd   :  { %v211_v1 = vadd.f32 %v325_v62, %v210_v63  ;;  %v411_v2 = vpop.f32.mrb[1].mxu1 }
 0x1df   :  { %v214_v3 = vmax.f32 %v211_v1, 0.0 }
 0x1e1   :  { %445 = vmatmul.mubr.f32.vlgmr.msra.gmra.mrb[2].mxu0 %v214_v3 }
 0x2b4   :  { %v302_v0 = vpop.f32.mrb[2].mxu0 }
 0x2b5   :  { %v303_v5 = vadd.f32 %v326_v4, %v302_v0  ;;  %v446_v6 = vpop.f32.mrb[3].mxu0 }
 0x2b7   :  { %306 = vst [vmem:[#allocation7] sm:$0xff] %v303_v5 }
 0x2b8   :  { %564 = shalt.err (!%p561_p6)
}
 0x2b9   :  { %s565_s10 = scalar_lea.hbm %s670_s2, 128 }
 0x2ba   :  { %p566_p7 = scmp.ne.s32.totalorder %s670_s2, %s565_s10  ;;  %p569_p8 = scmp.lt.u32.totalorder %s565_s10, %s670_s2 }
 0x2bc   :  { %p571_p9 = pnand %p569_p8, %p566_p7 }
 0x2be   :  { %574 = shalt.err (!%p571_p9)
}
 0x2bf   :  { %316 = dma.vmem_to_hbm [thread:$0]  %s314_s6, 128, %s670_s2, [#allocation4]  }
 0x2c0   :  { %579 = dma.done.wait [#allocation4], 128  }
 0x2c1   :  { %580 = vsyncadd [#allocation4], 4294967168 }
 0x2c2   :  { %320 = vsyncpa [#allocation3], 1 }
 0x2c3   :  { %321 = vsyncpa [#allocation6], 1 }
 0x2c4   :  { %322 = vsyncpa [#allocation4], 1 }

</bundles_post_ra>
